<compile_context>
chip_gen: v5e
topology: v5e:2x2
jax: 0.10.0
libtpu: 0.0.40
codegen_flags: <defaults>
</compile_context>

<pallas_src>
import functools

import jax
import jax.numpy as jnp
from jax import lax
from jax.experimental import pallas as pl
from jax.experimental.pallas import tpu as pltpu


def _round_up(x, m):
    return (x + m - 1) // m * m


def _cdiv(a, b):
    return -(-a // b)


def double_conv_kernel(x_ref, w1_ref, b1_ref, w2_ref, b2_ref, mask_ref,
                       o_ref, col_ref, mid_ref, *,
                       nb, cin_p, cout_p, wp, ck, nchunks, lp, interior_off, sp_mid):
    # lane offset so padded-flat index f of the intermediate lives at lane f + interior_off,
    # with the interior starting at the 128-aligned lane `interior_off`.
    shift = interior_off - (wp + 1)

    # zero halo strips of the re-padded intermediate (rewritten every grid step -> megacore safe)
    mid_ref[:, :interior_off] = jnp.zeros((cout_p, interior_off), mid_ref.dtype)
    if sp_mid > interior_off + lp:
        mid_ref[:, interior_off + lp:] = jnp.zeros(
            (cout_p, sp_mid - (interior_off + lp)), mid_ref.dtype)

    def per_image(n, carry):
        # ---- conv1: ReLU(W1 @ im2col(x)) * mask -> re-padded intermediate, per lane chunk ----
        for c in range(nchunks):
            base = c * ck
            for k in range(9):
                dy, dx = divmod(k, 3)
                s = base + dy * wp + dx
                col_ref[k * cin_p:(k + 1) * cin_p, :] = x_ref[n, :, s:s + ck]
            a = jnp.dot(w1_ref[...], col_ref[:9 * cin_p, :],
                        preferred_element_type=jnp.float32)
            a = jnp.maximum(a + b1_ref[...], 0.0) * mask_ref[:, base:base + ck]
            mid_ref[:, interior_off + base:interior_off + base + ck] = a.astype(mid_ref.dtype)

        # ---- conv2: ReLU(W2 @ im2col(mid)) -> output block, per lane chunk ----
        for c in range(nchunks):
            base = c * ck
            for k in range(9):
                dy, dx = divmod(k, 3)
                s = base + dy * wp + dx + shift
                col_ref[k * cout_p:(k + 1) * cout_p, :] = mid_ref[:, s:s + ck]
            a = jnp.dot(w2_ref[...], col_ref[:9 * cout_p, :],
                        preferred_element_type=jnp.float32)
            a = jnp.maximum(a + b2_ref[...], 0.0)   # invalid columns cropped in the wrapper
            o_ref[n, :, base:base + ck] = a.astype(o_ref.dtype)
        return carry

    lax.fori_loop(0, nb, per_image, 0)


def double_conv(x, w1, b1, w2, b2, *, compute_dtype=jnp.bfloat16, out_dtype=None):
    """x: (N, Cin, H, W) NCHW.  w1/w2 in PyTorch layout (Cout, Cin/Cout, 3, 3), biases (Cout,).

    compute_dtype: MXU operand dtype (bf16 default for v5e/v6e/v7x full rate; f32 for exactness).
    out_dtype: kernel output dtype (defaults to compute_dtype). Accumulation is always f32.
    """
    N, Cin, H, W = x.shape
    Cout = w1.shape[0]
    cdt = jnp.dtype(compute_dtype)
    odt = cdt if out_dtype is None else jnp.dtype(out_dtype)
    assert cdt in (jnp.dtype(jnp.float32), jnp.dtype(jnp.bfloat16)), cdt
    cbytes, obytes = cdt.itemsize, odt.itemsize

    pack = 8 if cbytes == 4 else 16                 # sublane pack (rows per 32-bit vreg row)
    cin_p, cout_p = _round_up(Cin, pack), _round_up(Cout, pack)
    maxc_p = max(cin_p, cout_p)

    Hp, Wp = H + 2, W + 2
    L = H * Wp                                      # flattened output length (padded-width stride)

    # --- per-generation VMEM budget ---
    try:
        vmem_phys = int(getattr(pltpu.get_tpu_info(), "vmem_capacity_bytes", 64 << 20))
    except Exception:
        vmem_phys = 64 << 20
    budget = (vmem_phys * 3) // 4

    # --- lane chunk size: bounds im2col slab + f32 act temporaries ---
    slab_budget = max(budget // 6, 1 << 19)
    ck = max(128, min(8192, (slab_budget // (9 * maxc_p * cbytes)) // 128 * 128))
    nchunks = max(1, _cdiv(L, ck))
    ck = _round_up(_cdiv(L, nchunks), 128)
    Lp = nchunks * ck                               # lane-dense (128-multiple) output length

    Sp = _round_up(Lp + 2 * Wp + 2, 128)            # input lane extent incl. tap-shift slack
    interior_off = _round_up(Wp + 1, 128)           # 128-aligned start of intermediate interior
    Sp_mid = _round_up(interior_off + Lp + Wp + 1, 128)

    # --- images per grid step: divide N exactly, keep >=2 grid steps, fit VMEM budget ---
    def step_bytes(nb_):
        return (2 * nb_ * cin_p * Sp * cbytes           # input block (double buffered)
                + 2 * nb_ * Cout * Lp * obytes          # output block (double buffered)
                + 2 * (cout_p * 9 * cin_p + Cout * 9 * cout_p) * cbytes   # packed weights
                + 2 * (cout_p + Cout + Lp) * 4          # biases + mask
                + 9 * maxc_p * ck * cbytes              # shared im2col slab
                + cout_p * Sp_mid * cbytes              # re-padded intermediate (one image)
                + 2 * cout_p * ck * 4)                  # f32 act temporaries (headroom)

    steps_target = min(N, 4)
    nb_cap = min(8, max(1, N // steps_target))
    nb = 1
    for d in range(1, nb_cap + 1):
        if N % d == 0 and step_bytes(d) <= budget:
            nb = d
    vmem_limit = int(min(vmem_phys, max(32 << 20, (step_bytes(nb) * 3) // 2 + (8 << 20))))

    # --- glue: channel pad to sublane pack, spatial halo pad, flatten rows into the lane axis ---
    xp = jnp.pad(x.astype(cdt), ((0, 0), (0, cin_p - Cin), (1, 1), (1, 1)))
    xf = jnp.pad(xp.reshape(N, cin_p, Hp * Wp), ((0, 0), (0, 0), (0, Sp - Hp * Wp)))

    # dense im2col weights, column index = (dy*3+dx)*C_p + channel; pad rows/channels are zero
    kw1 = jnp.pad(jnp.transpose(w1, (0, 2, 3, 1)),
                  ((0, cout_p - Cout), (0, 0), (0, 0), (0, cin_p - Cin)))
    kw1 = kw1.reshape(cout_p, 9 * cin_p).astype(cdt)
    kb1 = jnp.pad(b1, (0, cout_p - Cout)).reshape(cout_p, 1).astype(jnp.float32)
    kw2 = jnp.pad(jnp.transpose(w2, (0, 2, 3, 1)),
                  ((0, 0), (0, 0), (0, 0), (0, cout_p - Cout)))
    kw2 = kw2.reshape(Cout, 9 * cout_p).astype(cdt)
    kb2 = b2.reshape(Cout, 1).astype(jnp.float32)

    # validity mask over the lane-padded output axis (kills padded-width cols and the Lp tail);
    # required so the intermediate that conv2 reads back as halo is exactly zero.
    pos = jnp.arange(Lp, dtype=jnp.int32)
    mask = ((pos < L) & (pos % Wp < W)).astype(jnp.float32).reshape(1, Lp)

    kernel = functools.partial(
        double_conv_kernel, nb=nb, cin_p=cin_p, cout_p=cout_p, wp=Wp, ck=ck,
        nchunks=nchunks, lp=Lp, interior_off=interior_off, sp_mid=Sp_mid)

    out_flat = pl.pallas_call(
        kernel,
        out_shape=jax.ShapeDtypeStruct((N, Cout, Lp), odt),
        grid_spec=pltpu.PrefetchScalarGridSpec(
            num_scalar_prefetch=0,
            grid=(N // nb,),
            in_specs=[
                pl.BlockSpec((nb, cin_p, Sp), lambda i: (i, 0, 0)),
                pl.BlockSpec((cout_p, 9 * cin_p), lambda i: (0, 0)),
                pl.BlockSpec((cout_p, 1), lambda i: (0, 0)),
                pl.BlockSpec((Cout, 9 * cout_p), lambda i: (0, 0)),
                pl.BlockSpec((Cout, 1), lambda i: (0, 0)),
                pl.BlockSpec((1, Lp), lambda i: (0, 0)),
            ],
            out_specs=pl.BlockSpec((nb, Cout, Lp), lambda i: (i, 0, 0)),
            scratch_shapes=[
                pltpu.VMEM((9 * maxc_p, ck), cdt),     # shared im2col slab (both convs)
                pltpu.VMEM((cout_p, Sp_mid), cdt),     # re-padded intermediate (single image)
            ],
        ),
        compiler_params=pltpu.CompilerParams(
            dimension_semantics=("parallel",),
            vmem_limit_bytes=vmem_limit,
        ),
    )(xf, kw1, kb1, kw2, kb2, mask)

    # glue: crop lane-tail padding and padded-width stride; back to NCHW
    return out_flat[:, :, :L].reshape(N, Cout, H, Wp)[:, :, :, :W]


if __name__ == "__main__":
    N, Cin, Cout, H, W = 2, 4, 8, 16, 16

    key = jax.random.PRNGKey(0)
    k1, k2, k3, k4, k5 = jax.random.split(key, 5)
    x = jax.random.normal(k1, (N, Cin, H, W), jnp.float32)
    w1 = jax.random.normal(k2, (Cout, Cin, 3, 3), jnp.float32) * 0.2
    b1 = jax.random.normal(k3, (Cout,), jnp.float32) * 0.1
    w2 = jax.random.normal(k4, (Cout, Cout, 3, 3), jnp.float32) * 0.2
    b2 = jax.random.normal(k5, (Cout,), jnp.float32) * 0.1

    # pure-JAX reference (same semantics as the PyTorch module)
    def conv_relu(inp, w, b):
        y = jax.lax.conv_general_dilated(
            inp, w, window_strides=(1, 1), padding=((1, 1), (1, 1)),
            dimension_numbers=("NCHW", "OIHW", "NCHW"))
        return jnp.maximum(y + b[None, :, None, None], 0.0)

    expected = conv_relu(conv_relu(x, w1, b1), w2, b2)

    # exact f32 path
    out_f32 = double_conv(x, w1, b1, w2, b2, compute_dtype=jnp.float32)
    jax.block_until_ready(out_f32)
    assert out_f32.shape == expected.shape == (N, Cout, H, W)
    assert jnp.allclose(out_f32, expected, atol=1e-4, rtol=1e-4), \
        f"f32 max abs err = {float(jnp.max(jnp.abs(out_f32 - expected)))}"

    # default bf16-operand path (f32 accumulation) — quantization-level tolerance
    out_bf16 = double_conv(x, w1, b1, w2, b2)
    jax.block_until_ready(out_bf16)
    assert out_bf16.shape == expected.shape
    rel = float(jnp.max(jnp.abs(out_bf16.astype(jnp.float32) - expected))
                / (jnp.max(jnp.abs(expected)) + 1e-6))
    assert rel < 0.1, f"bf16 relative-to-scale err = {rel}"

    print("KERNEL_OK")
</pallas_src>

<mosaic_0001>
module attributes {stable_mosaic.version = 11 : i64} {
  func.func @double_conv_kernel(%arg0: i32, %arg1: memref<1x8x512xf32, #tpu.memory_space<vmem>>, %arg2: memref<8x72xf32, #tpu.memory_space<vmem>>, %arg3: memref<8x1xf32, #tpu.memory_space<vmem>>, %arg4: memref<8x72xf32, #tpu.memory_space<vmem>>, %arg5: memref<8x1xf32, #tpu.memory_space<vmem>>, %arg6: memref<1x384xf32, #tpu.memory_space<vmem>>, %arg7: memref<1x8x384xf32, #tpu.memory_space<vmem>>, %arg8: memref<72x384xf32, #tpu.memory_space<vmem>>, %arg9: memref<8x640xf32, #tpu.memory_space<vmem>>) attributes {dimension_semantics = [#tpu.dimension_semantics<parallel>], iteration_bounds = array<i64: 2>, scalar_prefetch = 0 : i64, scratch_operands = 2 : i64, tpu.core_type = #tpu.core_type<tc>, window_params = [{transform_indices = @transform_0, window_bounds = array<i64: 1, 8, 512>}, {pipeline_mode = #tpu.pipeline_mode<synchronous>, transform_indices = @transform_1, window_bounds = array<i64: 8, 72>}, {pipeline_mode = #tpu.pipeline_mode<synchronous>, transform_indices = @transform_2, window_bounds = array<i64: 8, 1>}, {pipeline_mode = #tpu.pipeline_mode<synchronous>, transform_indices = @transform_3, window_bounds = array<i64: 8, 72>}, {pipeline_mode = #tpu.pipeline_mode<synchronous>, transform_indices = @transform_4, window_bounds = array<i64: 8, 1>}, {pipeline_mode = #tpu.pipeline_mode<synchronous>, transform_indices = @transform_5, window_bounds = array<i64: 1, 384>}, {transform_indices = @transform_6, window_bounds = array<i64: 1, 8, 384>}]} {
    %cst = arith.constant 0.000000e+00 : f32
    %0 = vector.broadcast %cst : f32 to vector<8x128xf32>
    %c0 = arith.constant 0 : index
    %c0_0 = arith.constant 0 : index
    %1 = vector.load %arg9[%c0, %c0_0] : memref<8x640xf32, #tpu.memory_space<vmem>>, vector<8x128xf32>
    tpu.vector_store %arg9[%c0, %c0_0], %0 {strides = array<i32>} : memref<8x640xf32, #tpu.memory_space<vmem>>, vector<8x128xf32>,
    %cst_1 = arith.constant 0.000000e+00 : f32
    %2 = vector.broadcast %cst_1 : f32 to vector<8x128xf32>
    %c0_2 = arith.constant 0 : index
    %c512 = arith.constant 512 : index
    %3 = vector.load %arg9[%c0_2, %c512] : memref<8x640xf32, #tpu.memory_space<vmem>>, vector<8x128xf32>
    tpu.vector_store %arg9[%c0_2, %c512], %2 {strides = array<i32>} : memref<8x640xf32, #tpu.memory_space<vmem>>, vector<8x128xf32>,
    %c0_i32 = arith.constant 0 : i32
    %4 = arith.index_cast %c0_i32 : i32 to index
    %c0_3 = arith.constant 0 : index
    %c0_4 = arith.constant 0 : index
    %5 = vector.load %arg1[%4, %c0_3, %c0_4] : memref<1x8x512xf32, #tpu.memory_space<vmem>>, vector<1x8x384xf32>
    %6 = vector.shape_cast %5 : vector<1x8x384xf32> to vector<8x384xf32>
    %c0_5 = arith.constant 0 : index
    %c0_6 = arith.constant 0 : index
    %7 = vector.load %arg8[%c0_5, %c0_6] : memref<72x384xf32, #tpu.memory_space<vmem>>, vector<8x384xf32>
    tpu.vector_store %arg8[%c0_5, %c0_6], %6 {strides = array<i32>} : memref<72x384xf32, #tpu.memory_space<vmem>>, vector<8x384xf32>,
    %8 = arith.index_cast %c0_i32 : i32 to index
    %c0_7 = arith.constant 0 : index
    %c1 = arith.constant 1 : index
    %9 = vector.load %arg1[%8, %c0_7, %c1] : memref<1x8x512xf32, #tpu.memory_space<vmem>>, vector<1x8x384xf32>
    %10 = vector.shape_cast %9 : vector<1x8x384xf32> to vector<8x384xf32>
    %c8 = arith.constant 8 : index
    %c0_8 = arith.constant 0 : index
    %11 = vector.load %arg8[%c8, %c0_8] : memref<72x384xf32, #tpu.memory_space<vmem>>, vector<8x384xf32>
    tpu.vector_store %arg8[%c8, %c0_8], %10 {strides = array<i32>} : memref<72x384xf32, #tpu.memory_space<vmem>>, vector<8x384xf32>,
    %12 = arith.index_cast %c0_i32 : i32 to index
    %c0_9 = arith.constant 0 : index
    %c2 = arith.constant 2 : index
    %13 = vector.load %arg1[%12, %c0_9, %c2] : memref<1x8x512xf32, #tpu.memory_space<vmem>>, vector<1x8x384xf32>
    %14 = vector.shape_cast %13 : vector<1x8x384xf32> to vector<8x384xf32>
    %c16 = arith.constant 16 : index
    %c0_10 = arith.constant 0 : index
    %15 = vector.load %arg8[%c16, %c0_10] : memref<72x384xf32, #tpu.memory_space<vmem>>, vector<8x384xf32>
    tpu.vector_store %arg8[%c16, %c0_10], %14 {strides = array<i32>} : memref<72x384xf32, #tpu.memory_space<vmem>>, vector<8x384xf32>,
    %16 = arith.index_cast %c0_i32 : i32 to index
    %c0_11 = arith.constant 0 : index
    %c18 = arith.constant 18 : index
    %17 = vector.load %arg1[%16, %c0_11, %c18] : memref<1x8x512xf32, #tpu.memory_space<vmem>>, vector<1x8x384xf32>
    %18 = vector.shape_cast %17 : vector<1x8x384xf32> to vector<8x384xf32>
    %c24 = arith.constant 24 : index
    %c0_12 = arith.constant 0 : index
    %19 = vector.load %arg8[%c24, %c0_12] : memref<72x384xf32, #tpu.memory_space<vmem>>, vector<8x384xf32>
    tpu.vector_store %arg8[%c24, %c0_12], %18 {strides = array<i32>} : memref<72x384xf32, #tpu.memory_space<vmem>>, vector<8x384xf32>,
    %20 = arith.index_cast %c0_i32 : i32 to index
    %c0_13 = arith.constant 0 : index
    %c19 = arith.constant 19 : index
    %21 = vector.load %arg1[%20, %c0_13, %c19] : memref<1x8x512xf32, #tpu.memory_space<vmem>>, vector<1x8x384xf32>
    %22 = vector.shape_cast %21 : vector<1x8x384xf32> to vector<8x384xf32>
    %c32 = arith.constant 32 : index
    %c0_14 = arith.constant 0 : index
    %23 = vector.load %arg8[%c32, %c0_14] : memref<72x384xf32, #tpu.memory_space<vmem>>, vector<8x384xf32>
    tpu.vector_store %arg8[%c32, %c0_14], %22 {strides = array<i32>} : memref<72x384xf32, #tpu.memory_space<vmem>>, vector<8x384xf32>,
    %24 = arith.index_cast %c0_i32 : i32 to index
    %c0_15 = arith.constant 0 : index
    %c20 = arith.constant 20 : index
    %25 = vector.load %arg1[%24, %c0_15, %c20] : memref<1x8x512xf32, #tpu.memory_space<vmem>>, vector<1x8x384xf32>
    %26 = vector.shape_cast %25 : vector<1x8x384xf32> to vector<8x384xf32>
    %c40 = arith.constant 40 : index
    %c0_16 = arith.constant 0 : index
    %27 = vector.load %arg8[%c40, %c0_16] : memref<72x384xf32, #tpu.memory_space<vmem>>, vector<8x384xf32>
    tpu.vector_store %arg8[%c40, %c0_16], %26 {strides = array<i32>} : memref<72x384xf32, #tpu.memory_space<vmem>>, vector<8x384xf32>,
    %28 = arith.index_cast %c0_i32 : i32 to index
    %c0_17 = arith.constant 0 : index
    %c36 = arith.constant 36 : index
    %29 = vector.load %arg1[%28, %c0_17, %c36] : memref<1x8x512xf32, #tpu.memory_space<vmem>>, vector<1x8x384xf32>
    %30 = vector.shape_cast %29 : vector<1x8x384xf32> to vector<8x384xf32>
    %c48 = arith.constant 48 : index
    %c0_18 = arith.constant 0 : index
    %31 = vector.load %arg8[%c48, %c0_18] : memref<72x384xf32, #tpu.memory_space<vmem>>, vector<8x384xf32>
    tpu.vector_store %arg8[%c48, %c0_18], %30 {strides = array<i32>} : memref<72x384xf32, #tpu.memory_space<vmem>>, vector<8x384xf32>,
    %32 = arith.index_cast %c0_i32 : i32 to index
    %c0_19 = arith.constant 0 : index
    %c37 = arith.constant 37 : index
    %33 = vector.load %arg1[%32, %c0_19, %c37] : memref<1x8x512xf32, #tpu.memory_space<vmem>>, vector<1x8x384xf32>
    %34 = vector.shape_cast %33 : vector<1x8x384xf32> to vector<8x384xf32>
    %c56 = arith.constant 56 : index
    %c0_20 = arith.constant 0 : index
    %35 = vector.load %arg8[%c56, %c0_20] : memref<72x384xf32, #tpu.memory_space<vmem>>, vector<8x384xf32>
    tpu.vector_store %arg8[%c56, %c0_20], %34 {strides = array<i32>} : memref<72x384xf32, #tpu.memory_space<vmem>>, vector<8x384xf32>,
    %36 = arith.index_cast %c0_i32 : i32 to index
    %c0_21 = arith.constant 0 : index
    %c38 = arith.constant 38 : index
    %37 = vector.load %arg1[%36, %c0_21, %c38] : memref<1x8x512xf32, #tpu.memory_space<vmem>>, vector<1x8x384xf32>
    %38 = vector.shape_cast %37 : vector<1x8x384xf32> to vector<8x384xf32>
    %c64 = arith.constant 64 : index
    %c0_22 = arith.constant 0 : index
    %39 = vector.load %arg8[%c64, %c0_22] : memref<72x384xf32, #tpu.memory_space<vmem>>, vector<8x384xf32>
    tpu.vector_store %arg8[%c64, %c0_22], %38 {strides = array<i32>} : memref<72x384xf32, #tpu.memory_space<vmem>>, vector<8x384xf32>,
    %c0_23 = arith.constant 0 : index
    %c0_24 = arith.constant 0 : index
    %40 = vector.load %arg2[%c0_23, %c0_24] : memref<8x72xf32, #tpu.memory_space<vmem>>, vector<8x72xf32>
    %c0_25 = arith.constant 0 : index
    %c0_26 = arith.constant 0 : index
    %41 = vector.load %arg8[%c0_25, %c0_26] : memref<72x384xf32, #tpu.memory_space<vmem>>, vector<72x384xf32>
    %cst_27 = arith.constant dense<0.000000e+00> : vector<8x384xf32>
    %42 = tpu.matmul %40, %41, %cst_27 {dimension_numbers = #tpu.dot_dimension_numbers<[1], [0], [0], [1], [0, 0, 1, 1], [], []>} : vector<8x72xf32>, vector<72x384xf32>, vector<8x384xf32> -> vector<8x384xf32>
    %c0_28 = arith.constant 0 : index
    %c0_29 = arith.constant 0 : index
    %43 = vector.load %arg3[%c0_28, %c0_29] : memref<8x1xf32, #tpu.memory_space<vmem>>, vector<8x1xf32>
    %44 = vector.broadcast %43 : vector<8x1xf32> to vector<8x384xf32>
    %45 = arith.addf %42, %44 : vector<8x384xf32>
    %cst_30 = arith.constant 0.000000e+00 : f32
    %46 = vector.broadcast %cst_30 : f32 to vector<8x384xf32>
    %47 = arith.maximumf %45, %46 : vector<8x384xf32>
    %c0_31 = arith.constant 0 : index
    %c0_32 = arith.constant 0 : index
    %48 = vector.load %arg6[%c0_31, %c0_32] : memref<1x384xf32, #tpu.memory_space<vmem>>, vector<1x384xf32>
    %49 = vector.broadcast %48 : vector<1x384xf32> to vector<8x384xf32>
    %50 = arith.mulf %47, %49 : vector<8x384xf32>
    %c0_33 = arith.constant 0 : index
    %c128 = arith.constant 128 : index
    %51 = vector.load %arg9[%c0_33, %c128] : memref<8x640xf32, #tpu.memory_space<vmem>>, vector<8x384xf32>
    tpu.vector_store %arg9[%c0_33, %c128], %50 {strides = array<i32>} : memref<8x640xf32, #tpu.memory_space<vmem>>, vector<8x384xf32>,
    %c0_34 = arith.constant 0 : index
    %c109 = arith.constant 109 : index
    %52 = vector.load %arg9[%c0_34, %c109] : memref<8x640xf32, #tpu.memory_space<vmem>>, vector<8x384xf32>
    %c0_35 = arith.constant 0 : index
    %c0_36 = arith.constant 0 : index
    %53 = vector.load %arg8[%c0_35, %c0_36] : memref<72x384xf32, #tpu.memory_space<vmem>>, vector<8x384xf32>
    tpu.vector_store %arg8[%c0_35, %c0_36], %52 {strides = array<i32>} : memref<72x384xf32, #tpu.memory_space<vmem>>, vector<8x384xf32>,
    %c0_37 = arith.constant 0 : index
    %c110 = arith.constant 110 : index
    %54 = vector.load %arg9[%c0_37, %c110] : memref<8x640xf32, #tpu.memory_space<vmem>>, vector<8x384xf32>
    %c8_38 = arith.constant 8 : index
    %c0_39 = arith.constant 0 : index
    %55 = vector.load %arg8[%c8_38, %c0_39] : memref<72x384xf32, #tpu.memory_space<vmem>>, vector<8x384xf32>
    tpu.vector_store %arg8[%c8_38, %c0_39], %54 {strides = array<i32>} : memref<72x384xf32, #tpu.memory_space<vmem>>, vector<8x384xf32>,
    %c0_40 = arith.constant 0 : index
    %c111 = arith.constant 111 : index
    %56 = vector.load %arg9[%c0_40, %c111] : memref<8x640xf32, #tpu.memory_space<vmem>>, vector<8x384xf32>
    %c16_41 = arith.constant 16 : index
    %c0_42 = arith.constant 0 : index
    %57 = vector.load %arg8[%c16_41, %c0_42] : memref<72x384xf32, #tpu.memory_space<vmem>>, vector<8x384xf32>
    tpu.vector_store %arg8[%c16_41, %c0_42], %56 {strides = array<i32>} : memref<72x384xf32, #tpu.memory_space<vmem>>, vector<8x384xf32>,
    %c0_43 = arith.constant 0 : index
    %c127 = arith.constant 127 : index
    %58 = vector.load %arg9[%c0_43, %c127] : memref<8x640xf32, #tpu.memory_space<vmem>>, vector<8x384xf32>
    %c24_44 = arith.constant 24 : index
    %c0_45 = arith.constant 0 : index
    %59 = vector.load %arg8[%c24_44, %c0_45] : memref<72x384xf32, #tpu.memory_space<vmem>>, vector<8x384xf32>
    tpu.vector_store %arg8[%c24_44, %c0_45], %58 {strides = array<i32>} : memref<72x384xf32, #tpu.memory_space<vmem>>, vector<8x384xf32>,
    %c0_46 = arith.constant 0 : index
    %c128_47 = arith.constant 128 : index
    %60 = vector.load %arg9[%c0_46, %c128_47] : memref<8x640xf32, #tpu.memory_space<vmem>>, vector<8x384xf32>
    %c32_48 = arith.constant 32 : index
    %c0_49 = arith.constant 0 : index
    %61 = vector.load %arg8[%c32_48, %c0_49] : memref<72x384xf32, #tpu.memory_space<vmem>>, vector<8x384xf32>
    tpu.vector_store %arg8[%c32_48, %c0_49], %60 {strides = array<i32>} : memref<72x384xf32, #tpu.memory_space<vmem>>, vector<8x384xf32>,
    %c0_50 = arith.constant 0 : index
    %c129 = arith.constant 129 : index
    %62 = vector.load %arg9[%c0_50, %c129] : memref<8x640xf32, #tpu.memory_space<vmem>>, vector<8x384xf32>
    %c40_51 = arith.constant 40 : index
    %c0_52 = arith.constant 0 : index
    %63 = vector.load %arg8[%c40_51, %c0_52] : memref<72x384xf32, #tpu.memory_space<vmem>>, vector<8x384xf32>
    tpu.vector_store %arg8[%c40_51, %c0_52], %62 {strides = array<i32>} : memref<72x384xf32, #tpu.memory_space<vmem>>, vector<8x384xf32>,
    %c0_53 = arith.constant 0 : index
    %c145 = arith.constant 145 : index
    %64 = vector.load %arg9[%c0_53, %c145] : memref<8x640xf32, #tpu.memory_space<vmem>>, vector<8x384xf32>
    %c48_54 = arith.constant 48 : index
    %c0_55 = arith.constant 0 : index
    %65 = vector.load %arg8[%c48_54, %c0_55] : memref<72x384xf32, #tpu.memory_space<vmem>>, vector<8x384xf32>
    tpu.vector_store %arg8[%c48_54, %c0_55], %64 {strides = array<i32>} : memref<72x384xf32, #tpu.memory_space<vmem>>, vector<8x384xf32>,
    %c0_56 = arith.constant 0 : index
    %c146 = arith.constant 146 : index
    %66 = vector.load %arg9[%c0_56, %c146] : memref<8x640xf32, #tpu.memory_space<vmem>>, vector<8x384xf32>
    %c56_57 = arith.constant 56 : index
    %c0_58 = arith.constant 0 : index
    %67 = vector.load %arg8[%c56_57, %c0_58] : memref<72x384xf32, #tpu.memory_space<vmem>>, vector<8x384xf32>
    tpu.vector_store %arg8[%c56_57, %c0_58], %66 {strides = array<i32>} : memref<72x384xf32, #tpu.memory_space<vmem>>, vector<8x384xf32>,
    %c0_59 = arith.constant 0 : index
    %c147 = arith.constant 147 : index
    %68 = vector.load %arg9[%c0_59, %c147] : memref<8x640xf32, #tpu.memory_space<vmem>>, vector<8x384xf32>
    %c64_60 = arith.constant 64 : index
    %c0_61 = arith.constant 0 : index
    %69 = vector.load %arg8[%c64_60, %c0_61] : memref<72x384xf32, #tpu.memory_space<vmem>>, vector<8x384xf32>
    tpu.vector_store %arg8[%c64_60, %c0_61], %68 {strides = array<i32>} : memref<72x384xf32, #tpu.memory_space<vmem>>, vector<8x384xf32>,
    %c0_62 = arith.constant 0 : index
    %c0_63 = arith.constant 0 : index
    %70 = vector.load %arg4[%c0_62, %c0_63] : memref<8x72xf32, #tpu.memory_space<vmem>>, vector<8x72xf32>
    %c0_64 = arith.constant 0 : index
    %c0_65 = arith.constant 0 : index
    %71 = vector.load %arg8[%c0_64, %c0_65] : memref<72x384xf32, #tpu.memory_space<vmem>>, vector<72x384xf32>
    %cst_66 = arith.constant dense<0.000000e+00> : vector<8x384xf32>
    %72 = tpu.matmul %70, %71, %cst_66 {dimension_numbers = #tpu.dot_dimension_numbers<[1], [0], [0], [1], [0, 0, 1, 1], [], []>} : vector<8x72xf32>, vector<72x384xf32>, vector<8x384xf32> -> vector<8x384xf32>
    %c0_67 = arith.constant 0 : index
    %c0_68 = arith.constant 0 : index
    %73 = vector.load %arg5[%c0_67, %c0_68] : memref<8x1xf32, #tpu.memory_space<vmem>>, vector<8x1xf32>
    %74 = vector.broadcast %73 : vector<8x1xf32> to vector<8x384xf32>
    %75 = arith.addf %72, %74 : vector<8x384xf32>
    %cst_69 = arith.constant 0.000000e+00 : f32
    %76 = vector.broadcast %cst_69 : f32 to vector<8x384xf32>
    %77 = arith.maximumf %75, %76 : vector<8x384xf32>
    %78 = arith.index_cast %c0_i32 : i32 to index
    %c0_70 = arith.constant 0 : index
    %c0_71 = arith.constant 0 : index
    %79 = vector.load %arg7[%78, %c0_70, %c0_71] : memref<1x8x384xf32, #tpu.memory_space<vmem>>, vector<1x8x384xf32>
    %80 = vector.shape_cast %79 : vector<1x8x384xf32> to vector<8x384xf32>
    %81 = vector.shape_cast %77 : vector<8x384xf32> to vector<1x8x384xf32>
    tpu.vector_store %arg7[%78, %c0_70, %c0_71], %81 {strides = array<i32>} : memref<1x8x384xf32, #tpu.memory_space<vmem>>, vector<1x8x384xf32>,
    %c1_i32 = arith.constant 1 : i32
    return
  }
  func.func @transform_0(%arg0: i32) -> (i32, i32, i32) {
    %c0_i32 = arith.constant 0 : i32
    %c0_i32_0 = arith.constant 0 : i32
    %c0_i32_1 = arith.constant 0 : i32
    return %arg0, %c0_i32, %c0_i32_0 : i32, i32, i32
  }
  func.func @transform_1(%arg0: i32) -> (i32, i32) {
    %c0_i32 = arith.constant 0 : i32
    %c0_i32_0 = arith.constant 0 : i32
    %c0_i32_1 = arith.constant 0 : i32
    return %c0_i32, %c0_i32_0 : i32, i32
  }
  func.func @transform_2(%arg0: i32) -> (i32, i32) {
    %c0_i32 = arith.constant 0 : i32
    %c0_i32_0 = arith.constant 0 : i32
    %c0_i32_1 = arith.constant 0 : i32
    return %c0_i32, %c0_i32_0 : i32, i32
  }
  func.func @transform_3(%arg0: i32) -> (i32, i32) {
    %c0_i32 = arith.constant 0 : i32
    %c0_i32_0 = arith.constant 0 : i32
    %c0_i32_1 = arith.constant 0 : i32
    return %c0_i32, %c0_i32_0 : i32, i32
  }
  func.func @transform_4(%arg0: i32) -> (i32, i32) {
    %c0_i32 = arith.constant 0 : i32
    %c0_i32_0 = arith.constant 0 : i32
    %c0_i32_1 = arith.constant 0 : i32
    return %c0_i32, %c0_i32_0 : i32, i32
  }
  func.func @transform_5(%arg0: i32) -> (i32, i32) {
    %c0_i32 = arith.constant 0 : i32
    %c0_i32_0 = arith.constant 0 : i32
    %c0_i32_1 = arith.constant 0 : i32
    return %c0_i32, %c0_i32_0 : i32, i32
  }
  func.func @transform_6(%arg0: i32) -> (i32, i32, i32) {
    %c0_i32 = arith.constant 0 : i32
    %c0_i32_0 = arith.constant 0 : i32
    %c0_i32_1 = arith.constant 0 : i32
    return %arg0, %c0_i32, %c0_i32_0 : i32, i32, i32
  }
}

</mosaic_0001>

<bundles_post_ra>
// kernel: tpu_custom_call.1
= control target key start
LH: loop header
LB: loop body
LE: loop exit
PB: predicated region body
PF: predicated region fallthrough
CT: control target
= control target key end

     0   :  { %11 = vsyncpa [#allocation5], 0  ;;  %s1654_s0 = inlined_call_operand.hbm [shape: f32[2,8,512], index: 0, kind: input, shape index: {}]   ;;  %s1655_s1 = inlined_call_operand.vmem [shape: f32[8,72], index: 1, kind: input, shape index: {}]   ;;  %s1656_s2 = inlined_call_operand.vmem [shape: f32[8,1], index: 2, kind: input, shape index: {}]   ;;  %s1657_s3 = inlined_call_operand.vmem [shape: f32[8,72], index: 3, kind: input, shape index: {}]   ;;  %s1658_s4 = inlined_call_operand.vmem [shape: f32[8,1], index: 4, kind: input, shape index: {}]   ;;  %s1659_s5 = inlined_call_operand.vmem [shape: f32[1,384], index: 5, kind: input, shape index: {}]   ;;  %s1660_s6 = inlined_call_operand.hbm [shape: f32[2,8,384], index: 6, kind: output, shape index: {}]  }
   0x1   :  { %13 = vsyncpa [#allocation5 + $0x1], 0 }
   0x2   :  { %14 = vsyncpa [#allocation6], 0 }
   0x3   :  { %16 = vsyncpa [#allocation6 + $0x1], 0  ;;  %s1393_s21 = smov 0   ;;  %s1395_s22 = smov 0  }
   0x4   :  { %s1397_s23 = smov 0   ;;  %s1399_s24 = smov 0  }
   0x5 LB: > { %s1414_s25 = sadd.s32 4294967295, %s1341_s24   ;;  %s1002_s26 = sadd.s32 4294967294, %s1341_s24   ;;  %s1341_s24 = sphi %s1399_s24, %s1670_s24   ;;  %s1337_s23 = sphi %s1397_s23, %s1669_s23   ;;  %s1333_s22 = sphi %s1395_s22, %s1668_s22   ;;  %s1329_s21 = sphi %s1393_s21, %s1667_s21  }
   0x6   : > { %s1418_s27 = sadd.s32 1, %s1341_s24   ;;  %s29_s28 = sadd.s32 1, %s1337_s23 }
   0x7   : > { %s26_s29 = ssub.s32 %s1341_s24, %s1418_s27  ;;  %p36_p0 = scmp.ne.s32.totalorder %s1337_s23, %s1333_s22 }
   0x8   : > { %p27_p1 = scmp.eq.s32.totalorder %s26_s29, 0  ;;  %p37_p2 = scmp.eq.s32.totalorder %s1341_s24, 0 }
   0x9   : > { %p42_p3 = scmp.ne.s32.totalorder %s1333_s22, %s1329_s21  ;;  %p43_p4 = scmp.eq.s32.totalorder %s1414_s25, 0 }
   0xa   : > { %s1430_s30 = scalar_select %p27_p1, %s1337_s23, %s29_s28  }
   0xb   : > { %p1432_p5 = por %p37_p2, %p36_p0  ;;  %p1436_p6 = por %p43_p4, %p42_p3 }
   0xc   : > { %p171_p7 = scmp.eq.s32.totalorder %s1414_s25, 1  ;;  %p177_p8 = scmp.eq.s32.totalorder %s1002_s26, 1 }
   0xd   : > { %p1034_p10 = scmp.lt.s32.totalorder %s1341_s24, 2  ;;  %s212_s11 = sand.u32 1, %s1337_s23  }
   0xe   : > { %p1443_p11 = por %p171_p7, %p36_p0  ;;  %p1447_p12 = por %p177_p8, %p42_p3 }
   0xf   : > { %s1019_s12 = sshll.u32 %s1341_s24, 5  ;;  %s1005_s13 = sshll.u32 %s212_s11, 5 }
  0x10   : > { %s221_s16 = scalar_lea.hbm %s1654_s0, %s1019_s12  ;;  %s216_s18 = scalar_lea.vmem [#allocation4], %s1005_s13 }
  0x11   : > { %s223_s17 = sshll.u32 %s221_s16, 4  ;;  %s225_s19 = sshll.u32 %s216_s18, 4  ;;  %s224_s17 = int_to_ptr.hbm [resolvable:$true] %s223_s17  ;;  %s226_s19 = int_to_ptr.vmem [resolvable:$true] %s225_s19 }
  0x12   : > { %p1458_p13 = pnand %p1034_p10, %p1432_p5  ;;  %p1008_p0 = scmp.ge.s32.totalorder %s1341_s24, 1 }
  0x13   : > { %p230_p1 = scmp.lt.s32.totalorder %s1341_s24, 3  ;;  %s213_s26 = scalar_lea.sflag [#allocation5], %s212_s11 }
  0x14   : > { %s1245_s28 = sshra.s32 %s224_s17, 4  ;;  %p1249_p3 = pneg %p1458_p13  ;;  %s1246_s28 = int_to_ptr.hbm [resolvable:$true] %s1245_s28 }
  0x15   : > { %s1247_s29 = scalar_lea.hbm %s1246_s28, 32  ;;  %s1252_s7 = scalar_lea.hbm %s1654_s0, 64 }
  0x16   : > { %p1248_p2 = scmp.ne.s32.totalorder %s1246_s28, %s1247_s29  ;;  %p1253_p5 = scmp.lt.s32.totalorder %s1246_s28, %s1654_s0 }
  0x17   : > { %p1254_p8 = scmp.lt.s32.totalorder %s1252_s7, %s1247_s29 }
  0x18   : > { %p1250_p4 = pnand %p1249_p3, %p1248_p2 }
  0x19   : > { %p1255_p10 = por %p1254_p8, %p1253_p5 }
  0x1a   : > { %p1251_p7 = pneg %p1250_p4 }
  0x1c   : > { %p1256_p9 = pnand %p1255_p10, %p1251_p7 }
  0x1e   : > { %1259 = shalt.err (!%p1256_p9)
}
  0x1f   : > { %1029 = dma.hbm_to_vmem [thread:$0]  (!%p1458_p13), %s224_s17, 512, %s226_s19, %s213_s26  }
  0x20   : > { %p231_p2 = pnand %p1008_p0, %p230_p1 }
  0x21   : > { %s1479_s11 = sand.u32 (!%p231_p2), 1, %s1333_s22  }
  0x22   : > { %234 = sbr.rel (%p231_p2) target bundleno = 627 (0x273), region = 44  ;;  %s1009_s16 = sshll.u32 (!%p231_p2), %s1479_s11, 5 }
  0x23   : > { %s237_s18 = scalar_lea.sflag (!%p231_p2), [#allocation5], %s1479_s11  ;;  %s240_s28 = scalar_lea.vmem (!%p231_p2), [#allocation4], %s1009_s16 }
  0x27   : > { %1320 = dma.done.wait (%p1436_p6), %s237_s18, 512  }
  0x28   : > { %1322 = vsyncadd (%p1436_p6), %s237_s18, 4294966784  ;;  %v1487_v0 = vld [vmem:[%s240_s28] sm:$0xff]  ;;  %v1489_v1 = vld [vmem:[%s240_s28 + $0x8] sm:$0xff]  ;;  %s1343_s17 = smov 90   ;;  %s1344_s19 = smov 91   ;;  %vm476_vm0 = vcmask 736256  }
  0x29   : > { %v1083_v2 = vpack.i.bf16 %v1489_v1, %v1487_v0  ;;  %v1493_v3 = vld [vmem:[%s240_s28 + $0x10] sm:$0xff]  ;;  %v463_v4 = vld [vmem:[%s240_s28 + $0x18] sm:$0xff]  ;;  %s1345_s20 = smov 92   ;;  %s1346_s8 = smov 108   ;;  %vm450_vm1 = vcmask 744448   ;;  %vm424_vm2 = vcmask 752640  }
  0x2a   : > { %v1088_v5 = vpack.i.bf16 %v463_v4, %v1493_v3  ;;  %s1347_s26 = smov 109   ;;  %s1348_s29 = smov 110   ;;  %v514_v36 = vld [vmem:[%s1656_s2] sm:$0xff]  ;;  %vm398_vm3 = vcmask 883712   ;;  %vm372_vm4 = vcmask 891904   ;;  %v1351_v43 = vmov 0  }
  0x2b   : > { %1084 = vrot.lane.b32.xlu0 %v1083_v2, %s1343_s17  ;;  %1094 = vrot.lane.b32.xlu1 %v1083_v2, %s1344_s19  ;;  %s1349_s12 = smov 126   ;;  %s1350_s13 = smov 127   ;;  %vm346_vm5 = vcmask 900096   ;;  %vm320_vm6 = vcmask 1031168   ;;  %vm294_vm7 = vcmask 1039360   ;;  %vm520_vm8 = vcmask 588800  }
  0x2c   : > { %1104 = vrot.lane.b32.xlu2 %v1083_v2, %s1345_s20  ;;  %1163 = vset.pattern.permute.xlu1 %v1351_v43  ;;  %vm752_vm9 = vcmask 908288   ;;  %vm695_vm10 = vcmask 7168   ;;  %vm669_vm11 = vcmask 138240   ;;  %vm643_vm12 = vcmask 146432   ;;  %s1020_s14 = smul.u32 24, %s1479_s11 }
  0x2d   : > { %1244 = vset.pattern.permute.xlu0 %v1351_v43  ;;  %vm617_vm13 = vcmask 154624   ;;  %s1021_s15 = smul.u32 24, %s1414_s25  ;;  %s916_s25 = scalar_lea.sflag [#allocation6], %s1479_s11 }
  0x2f   : > { %s927_s28 = scalar_lea.hbm %s1660_s6, %s1021_s15 }
  0x33   : > { %1089 = vrot.lane.b32.xlu0 %v1088_v5, %s1343_s17  ;;  %1099 = vrot.lane.b32.xlu1 %v1088_v5, %s1344_s19  ;;  %s1352_s17 = smov 111   ;;  %s1354_s19 = smov 17  }
  0x34   : > { %1109 = vrot.lane.b32.xlu2 %v1088_v5, %s1345_s20  ;;  %s1355_s20 = smov 18  }
  0x3b   : > { %1119 = vrot.lane.b32.xlu1 %v1088_v5, %s1346_s8  ;;  %1114 = vrot.lane.b32.xlu0 %v1083_v2, %s1346_s8  ;;  %s1356_s8 = smov 1  }
  0x3c   : > { %1124 = vrot.lane.b32.xlu2 %v1083_v2, %s1347_s26 }
  0x43   : > { %1129 = vrot.lane.b32.xlu0 %v1088_v5, %s1347_s26  ;;  %1134 = vrot.lane.b32.xlu1 %v1083_v2, %s1348_s29 }
  0x44   : > { %1139 = vrot.lane.b32.xlu2 %v1088_v5, %s1348_s29 }
  0x4b   : > { %1149 = vrot.lane.b32.xlu1 %v1088_v5, %s1349_s12  ;;  %1144 = vrot.lane.b32.xlu0 %v1083_v2, %s1349_s12  ;;  %s1357_s12 = smov 19  }
  0x4c   : > { %1154 = vrot.lane.b32.xlu2 %v1083_v2, %s1350_s13 }
  0x53   : > { %1159 = vrot.lane.b32.xlu0 %v1088_v5, %s1350_s13  ;;  %517 = vperm.xlu1 %1163, %v514_v36  }
  0x86   : > { %v1105_v6 = vpop.permute.xlu2 %1104 }
  0x87   : > { %v1107_v9 = vunpack.i.h.bf16 %v1105_v6  ;;  %v1106_v10 = vunpack.i.l.bf16 %v1105_v6 }
  0x89   : > { %v425_v18 = vsel %vm424_vm2, %v1106_v10, %v1107_v9 }
  0x8e   : > { %v1110_v15 = vpop.permute.xlu2 %1109 }
  0x8f   : > { %v1112_v21 = vunpack.i.h.bf16 %v1110_v15  ;;  %v1111_v27 = vunpack.i.l.bf16 %v1110_v15 }
  0x91   : > { %v427_v32 = vsel %vm424_vm2, %v1111_v27, %v1112_v21  ;;  %v426_v33 = vsel %vm424_vm2, %v1107_v9, %v1111_v27 }
  0x96   : > { %v1125_v26 = vpop.permute.xlu2 %1124 }
  0x97   : > { %v1127_v34 = vunpack.i.h.bf16 %v1125_v26  ;;  %v1126_v35 = vunpack.i.l.bf16 %v1125_v26 }
  0x99   : > { %v373_v47 = vsel %vm372_vm4, %v1126_v35, %v1127_v34 }
  0x9d   : > { %v1085_v7 = vpop.permute.xlu0 %1084  ;;  %v1095_v8 = vpop.permute.xlu1 %1094 }
  0x9e   : > { %v1087_v11 = vunpack.i.h.bf16 %v1085_v7  ;;  %v1086_v12 = vunpack.i.l.bf16 %v1085_v7  ;;  %v1097_v13 = vunpack.i.h.bf16 %v1095_v8  ;;  %v1096_v14 = vunpack.i.l.bf16 %v1095_v8  ;;  %v1140_v48 = vpop.permute.xlu2 %1139 }
  0x9f   : > { %v1142_v49 = vunpack.i.h.bf16 %v1140_v48  ;;  %v1141_v50 = vunpack.i.l.bf16 %v1140_v48 }
  0xa0   : > { %v477_v16 = vsel %vm476_vm0, %v1086_v12, %v1087_v11  ;;  %v451_v17 = vsel %vm450_vm1, %v1096_v14, %v1097_v13  ;;  %v486_v14 = vld [vmem:[%s1655_s1] sm:$0xff] }
  0xa1   : > { %531 = vmatpush.msra.mxu0 %v477_v16  ;;  %v349_v57 = vsel %vm346_vm5, %v1141_v50, %v1142_v49 }
  0xa3   : > { %532 = vmatpush.msra.mxu0 %v451_v17 }
  0xa5   : > { %v1090_v19 = vpop.permute.xlu0 %1089  ;;  %v1100_v20 = vpop.permute.xlu1 %1099  ;;  %533 = vmatpush.msra.mxu0 %v425_v18 }
  0xa6   : > { %v1092_v22 = vunpack.i.h.bf16 %v1090_v19  ;;  %v1091_v23 = vunpack.i.l.bf16 %v1090_v19  ;;  %v1102_v24 = vunpack.i.h.bf16 %v1100_v20  ;;  %v1101_v25 = vunpack.i.l.bf16 %v1100_v20  ;;  %v1155_v62 = vpop.permute.xlu2 %1154 }
  0xa7   : > { %v1157_v63 = vunpack.i.h.bf16 %v1155_v62  ;;  %v1156_v2 = vunpack.i.l.bf16 %v1155_v62  ;;  %v840_v62 = vld [vmem:[%s1658_s4] sm:$0xff] }
  0xa8   : > { %v478_v28 = vsel %vm476_vm0, %v1087_v11, %v1091_v23  ;;  %v479_v29 = vsel %vm476_vm0, %v1091_v23, %v1092_v22  ;;  %v453_v30 = vsel %vm450_vm1, %v1101_v25, %v1102_v24  ;;  %v452_v31 = vsel %vm450_vm1, %v1097_v13, %v1101_v25  ;;  %v587_v22 = vld [vmem:[%s1659_s5] sm:$0x7] }
  0xa9   : > { %551 = vmatpush.msra.mxu1 %v478_v28  ;;  %571 = vmatpush.msra.mxu2 %v479_v29  ;;  %v295_v13 = vsel %vm294_vm7, %v1156_v2, %v1157_v63  ;;  %v589_v24 = vperm.slane %v587_v22, 0  ;;  %v590_v27 = vperm.slane %v587_v22, 1 }
  0xab   : > { %552 = vmatpush.msra.mxu1 %v452_v31  ;;  %572 = vmatpush.msra.mxu2 %v453_v30 }
  0xad   : > { %553 = vmatpush.msra.mxu1 %v426_v33  ;;  %v1120_v37 = vpop.permute.xlu1 %1119  ;;  %v1115_v38 = vpop.permute.xlu0 %1114  ;;  %573 = vmatpush.msra.mxu2 %v427_v32  ;;  %v591_v33 = vperm.slane %v587_v22, 2 }
  0xae   : > { %v1122_v39 = vunpack.i.h.bf16 %v1120_v37  ;;  %v1121_v40 = vunpack.i.l.bf16 %v1120_v37  ;;  %v1117_v41 = vunpack.i.h.bf16 %v1115_v38  ;;  %v1116_v42 = vunpack.i.l.bf16 %v1115_v38 }
  0xb0   : > { %v399_v44 = vsel %vm398_vm3, %v1116_v42, %v1117_v41  ;;  %v400_v45 = vsel %vm398_vm3, %v1117_v41, %v1121_v40  ;;  %v401_v46 = vsel %vm398_vm3, %v1121_v40, %v1122_v39 }
  0xb1   : > { %534 = vmatpush.msra.mxu0 %v399_v44  ;;  %554 = vmatpush.msra.mxu1 %v400_v45 }
  0xb2   : > { %574 = vmatpush.msra.mxu2 %v401_v46 }
  0xb3   : > { %535 = vmatpush.msra.mxu0 %v373_v47 }
  0xb5   : > { %v1130_v51 = vpop.permute.xlu0 %1129  ;;  %v1135_v52 = vpop.permute.xlu1 %1134 }
  0xb6   : > { %v1132_v53 = vunpack.i.h.bf16 %v1130_v51  ;;  %v1131_v54 = vunpack.i.l.bf16 %v1130_v51  ;;  %v1137_v55 = vunpack.i.h.bf16 %v1135_v52  ;;  %v1136_v56 = vunpack.i.l.bf16 %v1135_v52 }
  0xb8   : > { %v374_v58 = vsel %vm372_vm4, %v1127_v34, %v1131_v54  ;;  %v375_v59 = vsel %vm372_vm4, %v1131_v54, %v1132_v53  ;;  %v347_v60 = vsel %vm346_vm5, %v1136_v56, %v1137_v55  ;;  %v348_v61 = vsel %vm346_vm5, %v1137_v55, %v1141_v50 }
  0xb9   : > { %555 = vmatpush.msra.mxu1 %v374_v58  ;;  %575 = vmatpush.msra.mxu2 %v375_v59  ;;  %v1353_v34 = vmov 0.0  }
  0xba   : > { %536 = vmatpush.msra.mxu0 %v347_v60 }
  0xbb   : > { %556 = vmatpush.msra.mxu1 %v348_v61  ;;  %576 = vmatpush.msra.mxu2 %v349_v57 }
  0xbd   : > { %v1150_v4 = vpop.permute.xlu1 %1149  ;;  %v1145_v5 = vpop.permute.xlu0 %1144 }
  0xbe   : > { %v1152_v6 = vunpack.i.h.bf16 %v1150_v4  ;;  %v1151_v7 = vunpack.i.l.bf16 %v1150_v4  ;;  %v1147_v8 = vunpack.i.h.bf16 %v1145_v5  ;;  %v1146_v9 = vunpack.i.l.bf16 %v1145_v5 }
  0xc0   : > { %v321_v10 = vsel %vm320_vm6, %v1146_v9, %v1147_v8  ;;  %v322_v11 = vsel %vm320_vm6, %v1147_v8, %v1151_v7  ;;  %v323_v12 = vsel %vm320_vm6, %v1151_v7, %v1152_v6 }
  0xc1   : > { %537 = vmatpush.msra.mxu0 %v321_v10  ;;  %557 = vmatpush.msra.mxu1 %v322_v11 }
  0xc2   : > { %577 = vmatpush.msra.mxu2 %v323_v12 }
  0xc3   : > { %538 = vmatpush.msra.mxu0 %v295_v13 }
  0xc5   : > { %v1160_v15 = vpop.permute.xlu0 %1159  ;;  %539 = vmatpush.msra.mxu0 %v1487_v0  ;;  %v518_v20 = vpop.permute.xlu1 %517 }
  0xc6   : > { %v1162_v16 = vunpack.i.h.bf16 %v1160_v15  ;;  %v1161_v17 = vunpack.i.l.bf16 %v1160_v15  ;;  %1010 = vmatmul.msk.f32.vlgmr.msra.gmra.mxu0 %vm520_vm8, %v486_v14 }
  0xc8   : > { %v296_v18 = vsel %vm294_vm7, %v1157_v63, %v1161_v17  ;;  %v297_v19 = vsel %vm294_vm7, %v1161_v17, %v1162_v16 }
  0xc9   : > { %558 = vmatpush.msra.mxu1 %v296_v18  ;;  %578 = vmatpush.msra.mxu2 %v297_v19 }
  0xcb   : > { %559 = vmatpush.msra.mxu1 %v1489_v1  ;;  %579 = vmatpush.msra.mxu2 %v1493_v3 }
  0xcc   : > { %1011 = vmatmul.msk.f32.vlgmr.msra.gmra.mxu1 %vm520_vm8, %v486_v14  ;;  %1012 = vmatmul.msk.f32.vlgmr.msra.gmra.mxu2 %vm520_vm8, %v486_v14 }
 0x143   : > { %v541_v0 = vpop.f32.mrf.mxu0 }
 0x144   : > { %v542_v21 = vadd.f32 %v541_v0, %v518_v20 }
 0x146   : > { %v584_v23 = vmax.f32 %v542_v21, 0.0 }
 0x148   : > { %v595_v28 = vmul.f32 %v589_v24, %v584_v23 }
 0x149   : > { %v561_v25 = vpop.f32.mrf.mxu1 }
 0x14a   : > { %v562_v26 = vadd.f32 %v561_v25, %v518_v20  ;;  %v1189_v35 = vpack.i.bf16 %v595_v28, %v1353_v34 }
 0x14c   : > { %v585_v1 = vmax.f32 %v562_v26, 0.0  ;;  %v812_v26 = vld [vmem:[%s1657_s3] sm:$0xff] }
 0x14e   : > { %v1535_v29 = vmul.f32 %v590_v27, %v585_v1 }
 0x14f   : > { %v581_v30 = vpop.f32.mrf.mxu2 }
 0x150   : > { %v1174_v3 = vpack.i.bf16 %v1535_v29, %v595_v28  ;;  %v582_v31 = vadd.f32 %v581_v30, %v518_v20 }
 0x152   : > { %1175 = vrot.lane.b32.xlu1 %v1174_v3, %s1352_s17  ;;  %1170 = vrot.lane.b32.xlu0 %v1174_v3, %s1348_s29  ;;  %v586_v32 = vmax.f32 %v582_v31, 0.0 }
 0x153   : > { %1165 = vrot.lane.b32.xlu2 %v1174_v3, %s1347_s26 }
 0x154   : > { %v1541_v36 = vmul.f32 %v591_v33, %v586_v32 }
 0x156   : > { %v1204_v37 = vpack.i.bf16 0.0, %v1541_v36  ;;  %v1234_v38 = vpack.i.bf16 %v1541_v36, %v1535_v29 }
 0x15a   : > { %1190 = vrot.lane.b32.xlu1 %v1189_v35, %s1354_s19  ;;  %1195 = vrot.lane.b32.xlu0 %v1189_v35, %s1355_s20 }
 0x15b   : > { %1180 = vrot.lane.b32.xlu2 %v1174_v3, %s1350_s13 }
 0x162   : > { %1205 = vrot.lane.b32.xlu1 %v1204_v37, %s1348_s29  ;;  %1200 = vrot.lane.b32.xlu0 %v1204_v37, %s1347_s26 }
 0x163   : > { %1185 = vrot.lane.b32.xlu2 %v1189_v35, %s1356_s8 }
 0x16a   : > { %1210 = vrot.lane.b32.xlu1 %v1189_v35, %s1357_s12  ;;  %1215 = vrot.lane.b32.xlu0 %v1204_v37, %s1352_s17  ;;  %s269_s17 = scalar_lea.vmem [#allocation7], %s1020_s14 }
 0x16b   : > { %1220 = vrot.lane.b32.xlu2 %v1204_v37, %s1350_s13  ;;  %s1295_s13 = scalar_lea.hbm %s1660_s6, 48 }
 0x172   : > { %1235 = vrot.lane.b32.xlu1 %v1234_v38, %s1355_s20  ;;  %1230 = vrot.lane.b32.xlu0 %v1234_v38, %s1354_s19  ;;  %s929_s19 = sshll.u32 %s269_s17, 4  ;;  %s931_s20 = sshll.u32 %s927_s28, 4  ;;  %s930_s19 = int_to_ptr.vmem [resolvable:$true] %s929_s19  ;;  %s932_s20 = int_to_ptr.hbm [resolvable:$true] %s931_s20 }
 0x173   : > { %1225 = vrot.lane.b32.xlu2 %v1234_v38, %s1356_s8  ;;  %s1289_s8 = sshra.s32 %s932_s20, 4  ;;  %s1290_s8 = int_to_ptr.hbm [resolvable:$true] %s1289_s8 }
 0x174   : > { %p1296_p0 = scmp.lt.s32.totalorder %s1290_s8, %s1660_s6 }
 0x17a   : > { %843 = vperm.xlu0 %1244, %v840_v62  }
 0x17b   : > { %1240 = vrot.lane.b32.xlu2 %v1234_v38, %s1357_s12  ;;  %s1291_s12 = scalar_lea.hbm %s1290_s8, 24 }
 0x17c   : > { %p1292_p6 = scmp.ne.s32.totalorder %s1290_s8, %s1291_s12  ;;  %p1297_p1 = scmp.lt.s32.totalorder %s1295_s13, %s1291_s12 }
 0x17e   : > { %p1293_p9 = pnand %p1292_p6, %p1443_p11  ;;  %p1298_p3 = por %p1297_p1, %p1296_p0 }
 0x180   : > { %p1294_p13 = pneg %p1293_p9 }
 0x182   : > { %p1299_p4 = pnand %p1298_p3, %p1294_p13 }
 0x1ad   : > { %v1166_v39 = vpop.permute.xlu2 %1165 }
 0x1ae   : > { %v1168_v40 = vunpack.i.h.bf16 %v1166_v39  ;;  %v1167_v41 = vunpack.i.l.bf16 %v1166_v39 }
 0x1b0   : > { %v803_v42 = vsel %vm372_vm4, %v1167_v41, %v1168_v40 }
 0x1b1   : > { %856 = vmatpush.msra.mxu3 %v803_v42 }
 0x1b5   : > { %v1550_v43 = vpop.permute.xlu2 %1180 }
 0x1b6   : > { %v1183_v50 = vunpack.i.h.bf16 %v1550_v43  ;;  %v1182_v51 = vunpack.i.l.bf16 %v1550_v43 }
 0x1b8   : > { %v727_v57 = vsel %vm294_vm7, %v1182_v51, %v1183_v50 }
 0x1bd   : > { %v1558_v52 = vpop.permute.xlu2 %1185 }
 0x1be   : > { %v1188_v55 = vunpack.i.h.bf16 %v1558_v52  ;;  %v1187_v56 = vunpack.i.l.bf16 %v1558_v52 }
 0x1c0   : > { %v696_v4 = vsel %vm695_vm10, %v1187_v56, %v1188_v55 }
 0x1c4   : > { %v1552_v44 = vpop.permute.xlu1 %1175  ;;  %v1171_v45 = vpop.permute.xlu0 %1170 }
 0x1c5   : > { %v1178_v46 = vunpack.i.h.bf16 %v1552_v44  ;;  %v1177_v47 = vunpack.i.l.bf16 %v1552_v44  ;;  %v1173_v48 = vunpack.i.h.bf16 %v1171_v45  ;;  %v1172_v49 = vunpack.i.l.bf16 %v1171_v45  ;;  %v1221_v5 = vpop.permute.xlu2 %1220 }
 0x1c6   : > { %v1222_v19 = vunpack.i.l.bf16 %v1221_v5  ;;  %v1223_v25 = vunpack.i.h.bf16 %v1221_v5 }
 0x1c7   : > { %v778_v53 = vsel %vm346_vm5, %v1172_v49, %v1173_v48  ;;  %v753_v54 = vsel %vm752_vm9, %v1177_v47, %v1178_v46 }
 0x1c8   : > { %857 = vmatpush.msra.mxu3 %v778_v53  ;;  %v728_v30 = vsel %vm294_vm7, %v1183_v50, %v1222_v19  ;;  %v729_v32 = vsel %vm294_vm7, %v1222_v19, %v1223_v25 }
 0x1ca   : > { %858 = vmatpush.msra.mxu3 %v753_v54 }
 0x1cc   : > { %v1567_v58 = vpop.permute.xlu1 %1190  ;;  %v1569_v59 = vpop.permute.xlu0 %1195  ;;  %859 = vmatpush.msra.mxu3 %v727_v57 }
 0x1cd   : > { %v1193_v60 = vunpack.i.h.bf16 %v1567_v58  ;;  %v1192_v61 = vunpack.i.l.bf16 %v1567_v58  ;;  %v1198_v63 = vunpack.i.h.bf16 %v1569_v59  ;;  %v1197_v2 = vunpack.i.l.bf16 %v1569_v59  ;;  %v1226_v18 = vpop.permute.xlu2 %1225 }
 0x1ce   : > { %860 = vmatpush.msra.mxu3 %v595_v28  ;;  %v1227_v3 = vunpack.i.l.bf16 %v1226_v18  ;;  %v1228_v31 = vunpack.i.h.bf16 %v1226_v18 }
 0x1cf   : > { %v670_v6 = vsel %vm669_vm11, %v1192_v61, %v1193_v60  ;;  %v644_v7 = vsel %vm643_vm12, %v1197_v2, %v1198_v63 }
 0x1d0   : > { %861 = vmatpush.msra.mxu3 %v696_v4  ;;  %v698_v42 = vsel %vm695_vm10, %v1227_v3, %v1228_v31 }
 0x1d2   : > { %862 = vmatpush.msra.mxu3 %v670_v6 }
 0x1d4   : > { %v1206_v8 = vpop.permute.xlu1 %1205  ;;  %v1201_v9 = vpop.permute.xlu0 %1200  ;;  %863 = vmatpush.msra.mxu3 %v644_v7 }
 0x1d5   : > { %v1208_v10 = vunpack.i.h.bf16 %v1206_v8  ;;  %v1207_v11 = vunpack.i.l.bf16 %v1206_v8  ;;  %v1203_v12 = vunpack.i.h.bf16 %v1201_v9  ;;  %v1202_v13 = vunpack.i.l.bf16 %v1201_v9  ;;  %v1241_v35 = vpop.permute.xlu2 %1240 }
 0x1d6   : > { %v1243_v44 = vunpack.i.h.bf16 %v1241_v35  ;;  %v1242_v45 = vunpack.i.l.bf16 %v1241_v35 }
 0x1d7   : > { %v804_v14 = vsel %vm372_vm4, %v1168_v40, %v1202_v13  ;;  %v805_v15 = vsel %vm372_vm4, %v1202_v13, %v1203_v12  ;;  %v779_v16 = vsel %vm346_vm5, %v1173_v48, %v1207_v11  ;;  %v780_v17 = vsel %vm346_vm5, %v1207_v11, %v1208_v10 }
 0x1d8   : > { %876 = vmatpush.msrb.mxu0 %v804_v14  ;;  %896 = vmatpush.msrb.mxu1 %v805_v15  ;;  %v697_v40 = vsel %vm695_vm10, %v1188_v55, %v1227_v3  ;;  %v620_v48 = vsel %vm617_vm13, %v1242_v45, %v1243_v44 }
 0x1da   : > { %877 = vmatpush.msrb.mxu0 %v779_v16  ;;  %897 = vmatpush.msrb.mxu1 %v780_v17 }
 0x1dc   : > { %v1211_v20 = vpop.permute.xlu1 %1210  ;;  %v1216_v0 = vpop.permute.xlu0 %1215 }
 0x1dd   : > { %v1213_v21 = vunpack.i.h.bf16 %v1211_v20  ;;  %v1212_v22 = vunpack.i.l.bf16 %v1211_v20  ;;  %v1218_v23 = vunpack.i.h.bf16 %v1216_v0  ;;  %v1217_v24 = vunpack.i.l.bf16 %v1216_v0 }
 0x1df   : > { %v618_v27 = vsel %vm617_vm13, %v1212_v22, %v1213_v21  ;;  %v754_v28 = vsel %vm752_vm9, %v1178_v46, %v1217_v24  ;;  %v755_v1 = vsel %vm752_vm9, %v1217_v24, %v1218_v23  ;;  %v619_v47 = vsel %vm617_vm13, %v1213_v21, %v1242_v45 }
 0x1e0   : > { %864 = vmatpush.msra.mxu3 %v618_v27  ;;  %878 = vmatpush.msrb.mxu0 %v754_v28 }
 0x1e1   : > { %898 = vmatpush.msrb.mxu1 %v755_v1  ;;  %1013 = vmatmul.msk.f32.vlgmr.msra.gmra.mxu3 %vm520_vm8, %v812_v26 }
 0x1e2   : > { %879 = vmatpush.msrb.mxu0 %v728_v30 }
 0x1e3   : > { %899 = vmatpush.msrb.mxu1 %v729_v32 }
 0x1e4   : > { %v1236_v33 = vpop.permute.xlu1 %1235  ;;  %v1231_v34 = vpop.permute.xlu0 %1230  ;;  %880 = vmatpush.msrb.mxu0 %v1535_v29 }
 0x1e5   : > { %v1237_v37 = vunpack.i.l.bf16 %v1236_v33  ;;  %v1233_v38 = vunpack.i.h.bf16 %v1231_v34  ;;  %v1232_v39 = vunpack.i.l.bf16 %v1231_v34  ;;  %900 = vmatpush.msrb.mxu1 %v1541_v36  ;;  %v1238_v41 = vunpack.i.h.bf16 %v1236_v33 }
 0x1e6   : > { %881 = vmatpush.msrb.mxu0 %v697_v40 }
 0x1e7   : > { %901 = vmatpush.msrb.mxu1 %v698_v42  ;;  %v671_v43 = vsel %vm669_vm11, %v1193_v60, %v1232_v39  ;;  %v672_v29 = vsel %vm669_vm11, %v1232_v39, %v1233_v38  ;;  %v645_v36 = vsel %vm643_vm12, %v1198_v63, %v1237_v37  ;;  %v646_v46 = vsel %vm643_vm12, %v1237_v37, %v1238_v41 }
 0x1e8   : > { %882 = vmatpush.msrb.mxu0 %v671_v43 }
 0x1e9   : > { %902 = vmatpush.msrb.mxu1 %v672_v29 }
 0x1ea   : > { %883 = vmatpush.msrb.mxu0 %v645_v36 }
 0x1eb   : > { %903 = vmatpush.msrb.mxu1 %v646_v46 }
 0x1ec   : > { %884 = vmatpush.msrb.mxu0 %v619_v47  ;;  %v844_v49 = vpop.permute.xlu0 %843 }
 0x1ed   : > { %904 = vmatpush.msrb.mxu1 %v620_v48  ;;  %1014 = vmatmul.msk.f32.vlgmr.msrb.gmra.mxu0 %vm520_vm8, %v812_v26 }
 0x1ee   : > { %1015 = vmatmul.msk.f32.vlgmr.msrb.gmra.mxu1 %vm520_vm8, %v812_v26 }
 0x264   : > { %v866_v50 = vpop.f32.mrf.mxu3 }
 0x265   : > { %v867_v51 = vadd.f32 %v866_v50, %v844_v49 }
 0x267   : > { %v909_v52 = vmax.f32 %v867_v51, 0.0 }
 0x269   : > { %912 = vst [vmem:[%s269_s17] sm:$0xff] %v909_v52 }
 0x26a   : > { %v886_v53 = vpop.f32.mrf.mxu0 }
 0x26b   : > { %v887_v54 = vadd.f32 %v886_v53, %v844_v49  ;;  %v906_v55 = vpop.f32.mrf.mxu1 }
 0x26c   : > { %v907_v56 = vadd.f32 %v906_v55, %v844_v49 }
 0x26d   : > { %v910_v57 = vmax.f32 %v887_v54, 0.0 }
 0x26e   : > { %v911_v58 = vmax.f32 %v907_v56, 0.0 }
 0x26f   : > { %913 = vst [vmem:[%s269_s17 + $0x8] sm:$0xff] %v910_v57 }
 0x270   : > { %914 = vst [vmem:[%s269_s17 + $0x10] sm:$0xff] %v911_v58 }
 0x271   : > { %1302 = shalt.err (!%p1299_p4)
}
 0x272   : > { %1024 = dma.vmem_to_hbm [thread:$0]  (%p1443_p11), %s930_s19, 384, %s932_s20, %s916_s25  }
 0x273 PF: > { %s943_s11 = sand.u32 1, %s1329_s21   ;;  %p1666_p7 = scmp.ge.s32.totalorder %s1341_s24, 2 }
 0x274   : > { %s944_s15 = scalar_lea.sflag [#allocation6], %s943_s11 }
 0x275   : > { %p1031_p5 = pnand %p1666_p7, %p1447_p12 }
 0x277   : > { %p1032_p8 = pneg %p1031_p5 }
 0x279   : > { %1324 = dma.done.wait (%p1032_p8), %s944_s15, 384  }
 0x27a   : > { %1326 = vsyncadd (%p1032_p8), %s944_s15, 4294966912  ;;  %p19_p10 = scmp.ge.s32.totalorder %s1418_s27, 4   ;;  %s1667_s21 = smov %s1333_s22 }
 0x27b   : > { %s1668_s22 = smov %s1337_s23  ;;  %s1669_s23 = smov %s1430_s30 }
 0x27c   : > { %s1670_s24 = smov %s1418_s27  ;;  %21 = sbr.rel (!%p19_p10) target bundleno = 5 (0x5), region = 89 }
 0x281   :  { %950 = vsyncpa [#allocation5], 1 }
 0x282   :  { %952 = vsyncpa [#allocation5 + $0x1], 1 }
 0x283   :  { %953 = vsyncpa [#allocation6], 1 }
 0x284   :  { %955 = vsyncpa [#allocation6 + $0x1], 1 }

</bundles_post_ra>
